<compile_context>
chip_gen: v5e
topology: v5e:2x2
jax: 0.10.0
libtpu: 0.0.40
codegen_flags: <defaults>
</compile_context>

<pallas_src>
import functools

import jax
import jax.numpy as jnp
from jax.experimental import pallas as pl
from jax.experimental.pallas import tpu as pltpu


def _round_up(x, m):
    return ((x + m - 1) // m) * m


def _patch_embed_kernel(x_ref, wp_ref, bp_ref, g_ref, b_ref, wd_ref, bd_ref,
                        o_ref, *, hidden_size, eps):
    # Patch projection (the stride==kernel Conv2d expressed as a matmul).
    h = jnp.dot(x_ref[...], wp_ref[...], preferred_element_type=jnp.float32)
    h = h + bp_ref[...].astype(jnp.float32)

    # LayerNorm over the *true* hidden axis.  Columns >= hidden_size are
    # padding (exactly zero since Wp/bp padding is zero); mask them out of the
    # variance, and they remain zero after gamma/beta (also zero-padded).
    hd_pad = h.shape[-1]
    col = jax.lax.broadcasted_iota(jnp.int32, (1, hd_pad), 1)
    valid = (col < hidden_size).astype(jnp.float32)
    inv_n = 1.0 / float(hidden_size)
    mean = jnp.sum(h, axis=-1, keepdims=True) * inv_n
    hc = (h - mean) * valid
    var = jnp.sum(hc * hc, axis=-1, keepdims=True) * inv_n
    y = hc * jax.lax.rsqrt(var + eps)
    y = y * g_ref[...].astype(jnp.float32) + b_ref[...].astype(jnp.float32)

    # Dense(hidden -> hidden).
    out = jnp.dot(y.astype(wd_ref.dtype), wd_ref[...],
                  preferred_element_type=jnp.float32)
    out = out + bd_ref[...].astype(jnp.float32)
    o_ref[...] = out.astype(o_ref.dtype)


def vit_patch_embeddings(x, proj_w, proj_b, ln_gamma, ln_beta, dense_w, dense_b,
                         *, patch_size, eps=1e-6, tile_m=256,
                         compute_dtype=None):
    """Fused ViTPatchEmbeddings forward.

    x:        (B, C, H, W)       NCHW image (as the PyTorch module).
    proj_w:   (hidden, C, P, P)  Conv2d weight (PyTorch layout).
    proj_b:   (hidden,)
    ln_gamma, ln_beta: (hidden,) LayerNorm affine params.
    dense_w:  (hidden, hidden)   nn.Linear weight (PyTorch layout: out x in).
    dense_b:  (hidden,)
    Returns (B, num_patches, hidden).
    """
    pH, pW = patch_size if isinstance(patch_size, tuple) else (patch_size, patch_size)
    B, C, H, W = x.shape
    assert H % pH == 0 and W % pW == 0, "image size and patch size don't match"
    nH, nW = H // pH, W // pW
    hidden = proj_w.shape[0]
    K = C * pH * pW
    M = B * nH * nW
    cdt = x.dtype if compute_dtype is None else compute_dtype

    # --- patchify (layout only; matches Conv2d(stride=kernel) + permute/view) ---
    xp = x.reshape(B, C, nH, pH, nW, pW)
    xp = xp.transpose(0, 2, 4, 1, 3, 5).reshape(M, K)

    # Conv weight -> (K, hidden) matmul weight; Linear weight -> (in, out).
    wp = jnp.transpose(proj_w.reshape(hidden, K))
    wd = jnp.transpose(dense_w)

    # --- pad for lane-dense (multiple-of-128) matmuls and stores ---
    K_pad = _round_up(K, 128)
    Hp = _round_up(hidden, 128)
    tile = _round_up(min(tile_m, _round_up(M, 8)), 8)
    M_pad = _round_up(M, tile)

    xp = jnp.pad(xp, ((0, M_pad - M), (0, K_pad - K))).astype(cdt)
    wp = jnp.pad(wp, ((0, K_pad - K), (0, Hp - hidden))).astype(cdt)
    wd = jnp.pad(wd, ((0, Hp - hidden), (0, Hp - hidden))).astype(cdt)
    bp = jnp.pad(proj_b, (0, Hp - hidden)).reshape(1, Hp).astype(jnp.float32)
    g = jnp.pad(ln_gamma, (0, Hp - hidden)).reshape(1, Hp).astype(jnp.float32)
    bt = jnp.pad(ln_beta, (0, Hp - hidden)).reshape(1, Hp).astype(jnp.float32)
    bd = jnp.pad(dense_b, (0, Hp - hidden)).reshape(1, Hp).astype(jnp.float32)

    kern = functools.partial(_patch_embed_kernel, hidden_size=hidden, eps=eps)

    # VMEM budget: double-buffered x/out blocks, single weight residency,
    # live f32 intermediates, plus slack.
    item = jnp.dtype(cdt).itemsize
    vmem = 2 * tile * (K_pad + Hp) * max(item, 4)
    vmem += (K_pad * Hp + Hp * Hp + 4 * Hp) * item
    vmem += 6 * tile * Hp * 4
    vmem += 8 * 1024 * 1024
    vmem_limit = int(min(max(vmem, 32 * 1024 * 1024), 96 * 1024 * 1024))

    cost = pl.CostEstimate(
        flops=int(2 * M_pad * (K_pad * Hp + Hp * Hp) + 10 * M_pad * Hp),
        transcendentals=int(M_pad),
        bytes_accessed=int((M_pad * K_pad + K_pad * Hp + Hp * Hp) * item
                           + M_pad * Hp * x.dtype.itemsize + 4 * Hp * 4),
    )

    def run(single_buffer_weights):
        if single_buffer_weights:
            def wspec(shape):
                return pl.BlockSpec(shape, lambda i: (0, 0),
                                    pipeline_mode=pl.Buffered(1))
        else:
            def wspec(shape):
                return pl.BlockSpec(shape, lambda i: (0, 0))

        out = pl.pallas_call(
            kern,
            out_shape=jax.ShapeDtypeStruct((M_pad, Hp), x.dtype),
            grid_spec=pltpu.PrefetchScalarGridSpec(
                num_scalar_prefetch=0,
                grid=(M_pad // tile,),
                in_specs=[
                    pl.BlockSpec((tile, K_pad), lambda i: (i, 0)),  # patches
                    wspec((K_pad, Hp)),                             # Wp
                    wspec((1, Hp)),                                 # bp
                    wspec((1, Hp)),                                 # gamma
                    wspec((1, Hp)),                                 # beta
                    wspec((Hp, Hp)),                                # Wd
                    wspec((1, Hp)),                                 # bd
                ],
                out_specs=pl.BlockSpec((tile, Hp), lambda i: (i, 0)),
            ),
            compiler_params=pltpu.CompilerParams(
                dimension_semantics=("parallel",),
                vmem_limit_bytes=vmem_limit),
            cost_estimate=cost,
        )(xp, wp, bp, g, bt, wd, bd)
        return jax.block_until_ready(out)

    try:
        out2d = run(True)
    except Exception:
        # pl.Buffered(1) (single-buffered constant operands) not supported on
        # this JAX version -> fall back to default double-buffering.
        out2d = run(False)

    return out2d[:M, :hidden].reshape(B, nH * nW, hidden)


def _reference(x, proj_w, proj_b, g, b, dense_w, dense_b, *, patch_size,
               eps=1e-6):
    pH, pW = patch_size if isinstance(patch_size, tuple) else (patch_size, patch_size)
    B = x.shape[0]
    hidden = proj_w.shape[0]
    h = jax.lax.conv_general_dilated(
        x, proj_w, window_strides=(pH, pW), padding="VALID",
        dimension_numbers=("NCHW", "OIHW", "NCHW"))
    h = h + proj_b[None, :, None, None]
    h = jnp.transpose(h, (0, 2, 3, 1)).reshape(B, -1, hidden)
    mean = jnp.mean(h, axis=-1, keepdims=True)
    var = jnp.var(h, axis=-1, keepdims=True)
    hn = (h - mean) / jnp.sqrt(var + eps) * g + b
    return hn @ dense_w.T + dense_b


if __name__ == "__main__":
    batch, channels, image, patch = 2, 3, 16, 4
    hidden = 32

    key = jax.random.PRNGKey(0)
    kx, kw, kb, kg, kbt, kd, kdb, kx2 = jax.random.split(key, 8)

    x = jax.random.normal(kx, (batch, channels, image, image), jnp.float32)
    proj_w = jax.random.normal(kw, (hidden, channels, patch, patch),
                               jnp.float32) * (1.0 / (channels * patch * patch) ** 0.5)
    proj_b = jax.random.normal(kb, (hidden,), jnp.float32) * 0.02
    ln_g = 1.0 + 0.1 * jax.random.normal(kg, (hidden,), jnp.float32)
    ln_b = 0.02 * jax.random.normal(kbt, (hidden,), jnp.float32)
    dense_w = jax.random.normal(kd, (hidden, hidden), jnp.float32) * (1.0 / hidden ** 0.5)
    dense_b = jax.random.normal(kdb, (hidden,), jnp.float32) * 0.02

    out = vit_patch_embeddings(x, proj_w, proj_b, ln_g, ln_b, dense_w, dense_b,
                               patch_size=patch)
    out = jax.block_until_ready(out)
    ref = _reference(x, proj_w, proj_b, ln_g, ln_b, dense_w, dense_b,
                     patch_size=patch)
    n_patches = (image // patch) ** 2
    assert out.shape == (batch, n_patches, hidden)
    assert jnp.allclose(out, ref, atol=2e-3, rtol=2e-3), "mismatch vs reference"

    # Second config: token count (1 * 5 * 5 = 25) not a multiple of 8 /
    # of the row tile -> exercises the zero-padding path.
    x2 = jax.random.normal(kx2, (1, channels, 20, 20), jnp.float32)
    out2 = vit_patch_embeddings(x2, proj_w, proj_b, ln_g, ln_b, dense_w, dense_b,
                                patch_size=patch, tile_m=512)
    out2 = jax.block_until_ready(out2)
    ref2 = _reference(x2, proj_w, proj_b, ln_g, ln_b, dense_w, dense_b,
                      patch_size=patch)
    assert out2.shape == (1, 25, hidden)
    assert jnp.allclose(out2, ref2, atol=2e-3, rtol=2e-3), "mismatch (padded path)"

    print("KERNEL_OK")
</pallas_src>

<mosaic_0001>
module attributes {stable_mosaic.version = 11 : i64} {
  func.func @_patch_embed_kernel(%arg0: i32, %arg1: memref<32x128xf32, #tpu.memory_space<vmem>>, %arg2: memref<128x128xf32, #tpu.memory_space<vmem>>, %arg3: memref<1x128xf32, #tpu.memory_space<vmem>>, %arg4: memref<1x128xf32, #tpu.memory_space<vmem>>, %arg5: memref<1x128xf32, #tpu.memory_space<vmem>>, %arg6: memref<128x128xf32, #tpu.memory_space<vmem>>, %arg7: memref<1x128xf32, #tpu.memory_space<vmem>>, %arg8: memref<32x128xf32, #tpu.memory_space<vmem>>) attributes {dimension_semantics = [#tpu.dimension_semantics<parallel>], iteration_bounds = array<i64: 1>, scalar_prefetch = 0 : i64, scratch_operands = 0 : i64, tpu.core_type = #tpu.core_type<tc>, window_params = [{transform_indices = @transform_0, window_bounds = array<i64: 32, 128>}, {pipeline_mode = #tpu.pipeline_mode<synchronous>, transform_indices = @transform_1, window_bounds = array<i64: 128, 128>}, {pipeline_mode = #tpu.pipeline_mode<synchronous>, transform_indices = @transform_2, window_bounds = array<i64: 1, 128>}, {pipeline_mode = #tpu.pipeline_mode<synchronous>, transform_indices = @transform_3, window_bounds = array<i64: 1, 128>}, {pipeline_mode = #tpu.pipeline_mode<synchronous>, transform_indices = @transform_4, window_bounds = array<i64: 1, 128>}, {pipeline_mode = #tpu.pipeline_mode<synchronous>, transform_indices = @transform_5, window_bounds = array<i64: 128, 128>}, {pipeline_mode = #tpu.pipeline_mode<synchronous>, transform_indices = @transform_6, window_bounds = array<i64: 1, 128>}, {transform_indices = @transform_7, window_bounds = array<i64: 32, 128>}]} {
    %c0 = arith.constant 0 : index
    %c0_0 = arith.constant 0 : index
    %0 = vector.load %arg1[%c0, %c0_0] : memref<32x128xf32, #tpu.memory_space<vmem>>, vector<32x128xf32>
    %c0_1 = arith.constant 0 : index
    %c0_2 = arith.constant 0 : index
    %1 = vector.load %arg2[%c0_1, %c0_2] : memref<128x128xf32, #tpu.memory_space<vmem>>, vector<128x128xf32>
    %cst = arith.constant dense<0.000000e+00> : vector<32x128xf32>
    %2 = tpu.matmul %0, %1, %cst {dimension_numbers = #tpu.dot_dimension_numbers<[1], [0], [0], [1], [0, 0, 1, 1], [], []>} : vector<32x128xf32>, vector<128x128xf32>, vector<32x128xf32> -> vector<32x128xf32>
    %c0_3 = arith.constant 0 : index
    %c0_4 = arith.constant 0 : index
    %3 = vector.load %arg3[%c0_3, %c0_4] : memref<1x128xf32, #tpu.memory_space<vmem>>, vector<1x128xf32>
    %4 = vector.broadcast %3 : vector<1x128xf32> to vector<32x128xf32>
    %5 = arith.addf %2, %4 : vector<32x128xf32>
    %6 = tpu.iota {dimensions = array<i32: 1>} : vector<1x128xi32>
    %c32_i32 = arith.constant 32 : i32
    %7 = vector.broadcast %c32_i32 : i32 to vector<1x128xi32>
    %8 = arith.cmpi slt, %6, %7 : vector<1x128xi32>
    %9 = arith.extui %8 : vector<1x128xi1> to vector<1x128xi32>
    %10 = arith.sitofp %9 : vector<1x128xi32> to vector<1x128xf32>
    %cst_5 = arith.constant dense<0.000000e+00> : vector<32xf32>
    %11 = vector.multi_reduction <add>, %5, %cst_5 [1] : vector<32x128xf32> to vector<32xf32>
    %12 = vector.shape_cast %11 : vector<32xf32> to vector<32x1xf32>
    %cst_6 = arith.constant 3.125000e-02 : f32
    %13 = vector.broadcast %cst_6 : f32 to vector<32x1xf32>
    %14 = arith.mulf %12, %13 : vector<32x1xf32>
    %15 = vector.broadcast %14 : vector<32x1xf32> to vector<32x128xf32>
    %16 = arith.subf %5, %15 : vector<32x128xf32>
    %17 = vector.broadcast %10 : vector<1x128xf32> to vector<32x128xf32>
    %18 = arith.mulf %16, %17 : vector<32x128xf32>
    %19 = arith.mulf %18, %18 : vector<32x128xf32>
    %cst_7 = arith.constant dense<0.000000e+00> : vector<32xf32>
    %20 = vector.multi_reduction <add>, %19, %cst_7 [1] : vector<32x128xf32> to vector<32xf32>
    %21 = vector.shape_cast %20 : vector<32xf32> to vector<32x1xf32>
    %cst_8 = arith.constant 3.125000e-02 : f32
    %22 = vector.broadcast %cst_8 : f32 to vector<32x1xf32>
    %23 = arith.mulf %21, %22 : vector<32x1xf32>
    %cst_9 = arith.constant 9.99999997E-7 : f32
    %24 = vector.broadcast %cst_9 : f32 to vector<32x1xf32>
    %25 = arith.addf %23, %24 : vector<32x1xf32>
    %26 = math.rsqrt %25 : vector<32x1xf32>
    %27 = vector.broadcast %26 : vector<32x1xf32> to vector<32x128xf32>
    %28 = arith.mulf %18, %27 : vector<32x128xf32>
    %c0_10 = arith.constant 0 : index
    %c0_11 = arith.constant 0 : index
    %29 = vector.load %arg4[%c0_10, %c0_11] : memref<1x128xf32, #tpu.memory_space<vmem>>, vector<1x128xf32>
    %30 = vector.broadcast %29 : vector<1x128xf32> to vector<32x128xf32>
    %31 = arith.mulf %28, %30 : vector<32x128xf32>
    %c0_12 = arith.constant 0 : index
    %c0_13 = arith.constant 0 : index
    %32 = vector.load %arg5[%c0_12, %c0_13] : memref<1x128xf32, #tpu.memory_space<vmem>>, vector<1x128xf32>
    %33 = vector.broadcast %32 : vector<1x128xf32> to vector<32x128xf32>
    %34 = arith.addf %31, %33 : vector<32x128xf32>
    %c0_14 = arith.constant 0 : index
    %c0_15 = arith.constant 0 : index
    %35 = vector.load %arg6[%c0_14, %c0_15] : memref<128x128xf32, #tpu.memory_space<vmem>>, vector<128x128xf32>
    %cst_16 = arith.constant dense<0.000000e+00> : vector<32x128xf32>
    %36 = tpu.matmul %34, %35, %cst_16 {dimension_numbers = #tpu.dot_dimension_numbers<[1], [0], [0], [1], [0, 0, 1, 1], [], []>} : vector<32x128xf32>, vector<128x128xf32>, vector<32x128xf32> -> vector<32x128xf32>
    %c0_17 = arith.constant 0 : index
    %c0_18 = arith.constant 0 : index
    %37 = vector.load %arg7[%c0_17, %c0_18] : memref<1x128xf32, #tpu.memory_space<vmem>>, vector<1x128xf32>
    %38 = vector.broadcast %37 : vector<1x128xf32> to vector<32x128xf32>
    %39 = arith.addf %36, %38 : vector<32x128xf32>
    %c0_19 = arith.constant 0 : index
    %c0_20 = arith.constant 0 : index
    %40 = vector.load %arg8[%c0_19, %c0_20] : memref<32x128xf32, #tpu.memory_space<vmem>>, vector<32x128xf32>
    tpu.vector_store %arg8[%c0_19, %c0_20], %39 {strides = array<i32>} : memref<32x128xf32, #tpu.memory_space<vmem>>, vector<32x128xf32>,
    return
  }
  func.func @transform_0(%arg0: i32) -> (i32, i32) {
    %c0_i32 = arith.constant 0 : i32
    %c0_i32_0 = arith.constant 0 : i32
    return %arg0, %c0_i32 : i32, i32
  }
  func.func @transform_1(%arg0: i32) -> (i32, i32) {
    %c0_i32 = arith.constant 0 : i32
    %c0_i32_0 = arith.constant 0 : i32
    %c0_i32_1 = arith.constant 0 : i32
    return %c0_i32, %c0_i32_0 : i32, i32
  }
  func.func @transform_2(%arg0: i32) -> (i32, i32) {
    %c0_i32 = arith.constant 0 : i32
    %c0_i32_0 = arith.constant 0 : i32
    %c0_i32_1 = arith.constant 0 : i32
    return %c0_i32, %c0_i32_0 : i32, i32
  }
  func.func @transform_3(%arg0: i32) -> (i32, i32) {
    %c0_i32 = arith.constant 0 : i32
    %c0_i32_0 = arith.constant 0 : i32
    %c0_i32_1 = arith.constant 0 : i32
    return %c0_i32, %c0_i32_0 : i32, i32
  }
  func.func @transform_4(%arg0: i32) -> (i32, i32) {
    %c0_i32 = arith.constant 0 : i32
    %c0_i32_0 = arith.constant 0 : i32
    %c0_i32_1 = arith.constant 0 : i32
    return %c0_i32, %c0_i32_0 : i32, i32
  }
  func.func @transform_5(%arg0: i32) -> (i32, i32) {
    %c0_i32 = arith.constant 0 : i32
    %c0_i32_0 = arith.constant 0 : i32
    %c0_i32_1 = arith.constant 0 : i32
    return %c0_i32, %c0_i32_0 : i32, i32
  }
  func.func @transform_6(%arg0: i32) -> (i32, i32) {
    %c0_i32 = arith.constant 0 : i32
    %c0_i32_0 = arith.constant 0 : i32
    %c0_i32_1 = arith.constant 0 : i32
    return %c0_i32, %c0_i32_0 : i32, i32
  }
  func.func @transform_7(%arg0: i32) -> (i32, i32) {
    %c0_i32 = arith.constant 0 : i32
    %c0_i32_0 = arith.constant 0 : i32
    return %arg0, %c0_i32 : i32, i32
  }
}

module attributes {stable_mosaic.version = 11 : i64} {
  func.func @_patch_embed_kernel(%arg0: i32, %arg1: memref<32x128xf32, #tpu.memory_space<vmem>>, %arg2: memref<128x128xf32, #tpu.memory_space<vmem>>, %arg3: memref<1x128xf32, #tpu.memory_space<vmem>>, %arg4: memref<1x128xf32, #tpu.memory_space<vmem>>, %arg5: memref<1x128xf32, #tpu.memory_space<vmem>>, %arg6: memref<128x128xf32, #tpu.memory_space<vmem>>, %arg7: memref<1x128xf32, #tpu.memory_space<vmem>>, %arg8: memref<32x128xf32, #tpu.memory_space<vmem>>) attributes {dimension_semantics = [#tpu.dimension_semantics<parallel>], iteration_bounds = array<i64: 1>, scalar_prefetch = 0 : i64, scratch_operands = 0 : i64, tpu.core_type = #tpu.core_type<tc>, window_params = [{transform_indices = @transform_0, window_bounds = array<i64: 32, 128>}, {pipeline_mode = #tpu.pipeline_mode<synchronous>, transform_indices = @transform_1, window_bounds = array<i64: 128, 128>}, {pipeline_mode = #tpu.pipeline_mode<synchronous>, transform_indices = @transform_2, window_bounds = array<i64: 1, 128>}, {pipeline_mode = #tpu.pipeline_mode<synchronous>, transform_indices = @transform_3, window_bounds = array<i64: 1, 128>}, {pipeline_mode = #tpu.pipeline_mode<synchronous>, transform_indices = @transform_4, window_bounds = array<i64: 1, 128>}, {pipeline_mode = #tpu.pipeline_mode<synchronous>, transform_indices = @transform_5, window_bounds = array<i64: 128, 128>}, {pipeline_mode = #tpu.pipeline_mode<synchronous>, transform_indices = @transform_6, window_bounds = array<i64: 1, 128>}, {transform_indices = @transform_7, window_bounds = array<i64: 32, 128>}]} {
    %c0 = arith.constant 0 : index
    %c0_0 = arith.constant 0 : index
    %0 = vector.load %arg1[%c0, %c0_0] : memref<32x128xf32, #tpu.memory_space<vmem>>, vector<32x128xf32>
    %c0_1 = arith.constant 0 : index
    %c0_2 = arith.constant 0 : index
    %1 = vector.load %arg2[%c0_1, %c0_2] : memref<128x128xf32, #tpu.memory_space<vmem>>, vector<128x128xf32>
    %cst = arith.constant dense<0.000000e+00> : vector<32x128xf32>
    %2 = tpu.matmul %0, %1, %cst {dimension_numbers = #tpu.dot_dimension_numbers<[1], [0], [0], [1], [0, 0, 1, 1], [], []>} : vector<32x128xf32>, vector<128x128xf32>, vector<32x128xf32> -> vector<32x128xf32>
    %c0_3 = arith.constant 0 : index
    %c0_4 = arith.constant 0 : index
    %3 = vector.load %arg3[%c0_3, %c0_4] : memref<1x128xf32, #tpu.memory_space<vmem>>, vector<1x128xf32>
    %4 = vector.broadcast %3 : vector<1x128xf32> to vector<32x128xf32>
    %5 = arith.addf %2, %4 : vector<32x128xf32>
    %6 = tpu.iota {dimensions = array<i32: 1>} : vector<1x128xi32>
    %c32_i32 = arith.constant 32 : i32
    %7 = vector.broadcast %c32_i32 : i32 to vector<1x128xi32>
    %8 = arith.cmpi slt, %6, %7 : vector<1x128xi32>
    %9 = arith.extui %8 : vector<1x128xi1> to vector<1x128xi32>
    %10 = arith.sitofp %9 : vector<1x128xi32> to vector<1x128xf32>
    %cst_5 = arith.constant dense<0.000000e+00> : vector<32xf32>
    %11 = vector.multi_reduction <add>, %5, %cst_5 [1] : vector<32x128xf32> to vector<32xf32>
    %12 = vector.shape_cast %11 : vector<32xf32> to vector<32x1xf32>
    %cst_6 = arith.constant 3.125000e-02 : f32
    %13 = vector.broadcast %cst_6 : f32 to vector<32x1xf32>
    %14 = arith.mulf %12, %13 : vector<32x1xf32>
    %15 = vector.broadcast %14 : vector<32x1xf32> to vector<32x128xf32>
    %16 = arith.subf %5, %15 : vector<32x128xf32>
    %17 = vector.broadcast %10 : vector<1x128xf32> to vector<32x128xf32>
    %18 = arith.mulf %16, %17 : vector<32x128xf32>
    %19 = arith.mulf %18, %18 : vector<32x128xf32>
    %cst_7 = arith.constant dense<0.000000e+00> : vector<32xf32>
    %20 = vector.multi_reduction <add>, %19, %cst_7 [1] : vector<32x128xf32> to vector<32xf32>
    %21 = vector.shape_cast %20 : vector<32xf32> to vector<32x1xf32>
    %cst_8 = arith.constant 3.125000e-02 : f32
    %22 = vector.broadcast %cst_8 : f32 to vector<32x1xf32>
    %23 = arith.mulf %21, %22 : vector<32x1xf32>
    %cst_9 = arith.constant 9.99999997E-7 : f32
    %24 = vector.broadcast %cst_9 : f32 to vector<32x1xf32>
    %25 = arith.addf %23, %24 : vector<32x1xf32>
    %26 = math.rsqrt %25 : vector<32x1xf32>
    %27 = vector.broadcast %26 : vector<32x1xf32> to vector<32x128xf32>
    %28 = arith.mulf %18, %27 : vector<32x128xf32>
    %c0_10 = arith.constant 0 : index
    %c0_11 = arith.constant 0 : index
    %29 = vector.load %arg4[%c0_10, %c0_11] : memref<1x128xf32, #tpu.memory_space<vmem>>, vector<1x128xf32>
    %30 = vector.broadcast %29 : vector<1x128xf32> to vector<32x128xf32>
    %31 = arith.mulf %28, %30 : vector<32x128xf32>
    %c0_12 = arith.constant 0 : index
    %c0_13 = arith.constant 0 : index
    %32 = vector.load %arg5[%c0_12, %c0_13] : memref<1x128xf32, #tpu.memory_space<vmem>>, vector<1x128xf32>
    %33 = vector.broadcast %32 : vector<1x128xf32> to vector<32x128xf32>
    %34 = arith.addf %31, %33 : vector<32x128xf32>
    %c0_14 = arith.constant 0 : index
    %c0_15 = arith.constant 0 : index
    %35 = vector.load %arg6[%c0_14, %c0_15] : memref<128x128xf32, #tpu.memory_space<vmem>>, vector<128x128xf32>
    %cst_16 = arith.constant dense<0.000000e+00> : vector<32x128xf32>
    %36 = tpu.matmul %34, %35, %cst_16 {dimension_numbers = #tpu.dot_dimension_numbers<[1], [0], [0], [1], [0, 0, 1, 1], [], []>} : vector<32x128xf32>, vector<128x128xf32>, vector<32x128xf32> -> vector<32x128xf32>
    %c0_17 = arith.constant 0 : index
    %c0_18 = arith.constant 0 : index
    %37 = vector.load %arg7[%c0_17, %c0_18] : memref<1x128xf32, #tpu.memory_space<vmem>>, vector<1x128xf32>
    %38 = vector.broadcast %37 : vector<1x128xf32> to vector<32x128xf32>
    %39 = arith.addf %36, %38 : vector<32x128xf32>
    %c0_19 = arith.constant 0 : index
    %c0_20 = arith.constant 0 : index
    %40 = vector.load %arg8[%c0_19, %c0_20] : memref<32x128xf32, #tpu.memory_space<vmem>>, vector<32x128xf32>
    tpu.vector_store %arg8[%c0_19, %c0_20], %39 {strides = array<i32>} : memref<32x128xf32, #tpu.memory_space<vmem>>, vector<32x128xf32>,
    return
  }
  func.func @transform_0(%arg0: i32) -> (i32, i32) {
    %c0_i32 = arith.constant 0 : i32
    %c0_i32_0 = arith.constant 0 : i32
    return %arg0, %c0_i32 : i32, i32
  }
  func.func @transform_1(%arg0: i32) -> (i32, i32) {
    %c0_i32 = arith.constant 0 : i32
    %c0_i32_0 = arith.constant 0 : i32
    %c0_i32_1 = arith.constant 0 : i32
    return %c0_i32, %c0_i32_0 : i32, i32
  }
  func.func @transform_2(%arg0: i32) -> (i32, i32) {
    %c0_i32 = arith.constant 0 : i32
    %c0_i32_0 = arith.constant 0 : i32
    %c0_i32_1 = arith.constant 0 : i32
    return %c0_i32, %c0_i32_0 : i32, i32
  }
  func.func @transform_3(%arg0: i32) -> (i32, i32) {
    %c0_i32 = arith.constant 0 : i32
    %c0_i32_0 = arith.constant 0 : i32
    %c0_i32_1 = arith.constant 0 : i32
    return %c0_i32, %c0_i32_0 : i32, i32
  }
  func.func @transform_4(%arg0: i32) -> (i32, i32) {
    %c0_i32 = arith.constant 0 : i32
    %c0_i32_0 = arith.constant 0 : i32
    %c0_i32_1 = arith.constant 0 : i32
    return %c0_i32, %c0_i32_0 : i32, i32
  }
  func.func @transform_5(%arg0: i32) -> (i32, i32) {
    %c0_i32 = arith.constant 0 : i32
    %c0_i32_0 = arith.constant 0 : i32
    %c0_i32_1 = arith.constant 0 : i32
    return %c0_i32, %c0_i32_0 : i32, i32
  }
  func.func @transform_6(%arg0: i32) -> (i32, i32) {
    %c0_i32 = arith.constant 0 : i32
    %c0_i32_0 = arith.constant 0 : i32
    %c0_i32_1 = arith.constant 0 : i32
    return %c0_i32, %c0_i32_0 : i32, i32
  }
  func.func @transform_7(%arg0: i32) -> (i32, i32) {
    %c0_i32 = arith.constant 0 : i32
    %c0_i32_0 = arith.constant 0 : i32
    return %arg0, %c0_i32 : i32, i32
  }
}

</mosaic_0001>

<bundles_post_ra>
// kernel: tpu_custom_call.1
= control target key start
LH: loop header
LB: loop body
LE: loop exit
PB: predicated region body
PF: predicated region fallthrough
CT: control target
= control target key end

     0   :  { %12 = vsyncpa [#allocation3], 0  ;;  %s562_s0 = inlined_call_operand.hbm [shape: f32[32,128], index: 0, kind: input, shape index: {}]   ;;  %s563_s1 = inlined_call_operand.hbm [shape: f32[128,128], index: 1, kind: input, shape index: {}]   ;;  %s564_s2 = inlined_call_operand.vmem [shape: f32[1,128], index: 2, kind: input, shape index: {}]   ;;  %s565_s3 = inlined_call_operand.vmem [shape: f32[1,128], index: 3, kind: input, shape index: {}]   ;;  %s566_s4 = inlined_call_operand.vmem [shape: f32[1,128], index: 4, kind: input, shape index: {}]   ;;  %s567_s5 = inlined_call_operand.hbm [shape: f32[128,128], index: 5, kind: input, shape index: {}]   ;;  %s568_s6 = inlined_call_operand.vmem [shape: f32[1,128], index: 6, kind: input, shape index: {}]   ;;  %s569_s7 = inlined_call_operand.hbm [shape: f32[32,128], index: 7, kind: output, shape index: {}]  }
   0x1   :  { %13 = vsyncpa [#allocation6], 0 }
   0x2   :  { %14 = vsyncpa [#allocation4], 0  ;;  %s32_s26 = sshll.u32 %s563_s1, 4  ;;  %s459_s27 = smov [#allocation5]   ;;  %s33_s26 = int_to_ptr.hbm [resolvable:$true] %s32_s26 }
   0x3   :  { %s34_s28 = sshll.u32 %s459_s27, 4  ;;  %s19_s8 = sshll.u32 %s562_s0, 4  ;;  %s35_s28 = int_to_ptr.vmem [resolvable:$true] %s34_s28  ;;  %s20_s8 = int_to_ptr.hbm [resolvable:$true] %s19_s8 }
   0x4   :  { %s460_s9 = smov 128   ;;  %s461_s10 = smov 8  }
   0x5   :  { %40 = dma.hbm_to_vmem [thread:$0]  %s33_s26, 2048, %s35_s28, [#allocation6], %s460_s9, %s460_s9, %s461_s10  }
   0x6   :  { %s462_s11 = smov [#allocation2]   ;;  %s51_s1 = sshll.u32 %s567_s5, 4  ;;  %s52_s1 = int_to_ptr.hbm [resolvable:$true] %s51_s1 }
   0x7   :  { %s21_s12 = sshll.u32 %s462_s11, 4  ;;  %s463_s0 = smov [#allocation7]   ;;  %s22_s12 = int_to_ptr.vmem [resolvable:$true] %s21_s12 }
   0x8   :  { %27 = dma.hbm_to_vmem [thread:$0]  %s20_s8, 512, %s22_s12, [#allocation3], %s460_s9, %s460_s9, %s461_s10  }
   0x9   :  { %s53_s15 = sshll.u32 %s463_s0, 4  ;;  %s54_s15 = int_to_ptr.vmem [resolvable:$true] %s53_s15 }
   0xa   :  { %59 = dma.hbm_to_vmem [thread:$0]  %s52_s1, 2048, %s54_s15, [#allocation6], %s460_s9, %s460_s9, %s461_s10  }
   0xb   :  { %453 = dma.done.wait [#allocation3], 512  }
   0xc   :  { %454 = vsyncadd [#allocation3], 4294966784 }
   0xd   :  { %455 = dma.done.wait [#allocation6], 4096  }
   0xe   :  { %456 = vsyncadd [#allocation6], 4294963200  ;;  %v93_v0 = vld [vmem:[#allocation5 + $0x78] sm:$0xff]  ;;  %v92_v1 = vld [vmem:[#allocation5 + $0x70] sm:$0xff]  ;;  %v127_v29 = vlaneseq  ;;  %v464_v35 = vmov 0.0   ;;  %s465_s20 = smov [#allocation8]  }
   0xf   :  { %306 = vmatpush.msra.mxu2 %v93_v0  ;;  %98 = vmatpush.msra.mxu0 %v93_v0  ;;  %v91_v2 = vld [vmem:[#allocation5 + $0x68] sm:$0xff]  ;;  %v90_v3 = vld [vmem:[#allocation5 + $0x60] sm:$0xff]  ;;  %v89_v4 = vld [vmem:[#allocation5 + $0x58] sm:$0xff]  ;;  %s289_s21 = sshll.u32 %s465_s20, 4  ;;  %s291_s24 = sshll.u32 %s569_s7, 4  ;;  %s290_s21 = int_to_ptr.vmem [resolvable:$true] %s289_s21  ;;  %s292_s24 = int_to_ptr.hbm [resolvable:$true] %s291_s24 }
  0x10   :  { %v88_v5 = vld [vmem:[#allocation5 + $0x50] sm:$0xff]  ;;  %v87_v6 = vld [vmem:[#allocation5 + $0x48] sm:$0xff]  ;;  %v86_v7 = vld [vmem:[#allocation5 + $0x40] sm:$0xff]  ;;  %v128_v32 = vand.u32 127, %v127_v29 }
  0x11   :  { %307 = vmatpush.msra.mxu2 %v92_v1  ;;  %99 = vmatpush.msra.mxu0 %v92_v1  ;;  %v85_v8 = vld [vmem:[#allocation5 + $0x38] sm:$0xff]  ;;  %v84_v9 = vld [vmem:[#allocation5 + $0x30] sm:$0xff]  ;;  %v83_v10 = vld [vmem:[#allocation5 + $0x28] sm:$0xff] }
  0x12   :  { %v82_v11 = vld [vmem:[#allocation5 + $0x20] sm:$0xff]  ;;  %v81_v12 = vld [vmem:[#allocation5 + $0x18] sm:$0xff]  ;;  %v80_v13 = vld [vmem:[#allocation5 + $0x10] sm:$0xff]  ;;  %vm129_vm0 = vcmp.lt.s32.totalorder %v128_v32, 32 }
  0x13   :  { %308 = vmatpush.msra.mxu2 %v91_v2  ;;  %100 = vmatpush.msra.mxu0 %v91_v2  ;;  %v79_v14 = vld [vmem:[#allocation5 + $0x8] sm:$0xff]  ;;  %v78_v15 = vld [vmem:[#allocation5] sm:$0xff]  ;;  %v76_v16 = vld [vmem:[#allocation2 + $0x10] sm:$0xff]  ;;  %v305_v36 = vsel %vm129_vm0, 1.0, %v464_v35 }
  0x14   :  { %v74_v17 = vld [vmem:[#allocation2] sm:$0xff]  ;;  %v77_v18 = vld [vmem:[#allocation2 + $0x18] sm:$0xff]  ;;  %v75_v19 = vld [vmem:[#allocation2 + $0x8] sm:$0xff] }
  0x15   :  { %309 = vmatpush.msra.mxu2 %v90_v3  ;;  %101 = vmatpush.msra.mxu0 %v90_v3  ;;  %v345_v20 = vld [vmem:[%s564_s2] ss:$0 sm:$0xff]  ;;  %v247_v30 = vld [vmem:[#allocation7 + $0x78] sm:$0xff]  ;;  %v246_v31 = vld [vmem:[#allocation7 + $0x70] sm:$0xff] }
  0x16   :  { %322 = vmatpush.msra.mxu3 %v247_v30  ;;  %252 = vmatpush.msra.mxu1 %v247_v30  ;;  %v245_v55 = vld [vmem:[#allocation7 + $0x68] sm:$0xff]  ;;  %v244_v56 = vld [vmem:[#allocation7 + $0x60] sm:$0xff]  ;;  %v243_v57 = vld [vmem:[#allocation7 + $0x58] sm:$0xff] }
  0x17   :  { %310 = vmatpush.msra.mxu2 %v89_v4  ;;  %102 = vmatpush.msra.mxu0 %v89_v4  ;;  %v242_v58 = vld [vmem:[#allocation7 + $0x50] sm:$0xff]  ;;  %v241_v59 = vld [vmem:[#allocation7 + $0x48] sm:$0xff]  ;;  %v240_v60 = vld [vmem:[#allocation7 + $0x40] sm:$0xff] }
  0x18   :  { %323 = vmatpush.msra.mxu3 %v246_v31  ;;  %253 = vmatpush.msra.mxu1 %v246_v31  ;;  %v239_v61 = vld [vmem:[#allocation7 + $0x38] sm:$0xff]  ;;  %v238_v62 = vld [vmem:[#allocation7 + $0x30] sm:$0xff]  ;;  %v237_v63 = vld [vmem:[#allocation7 + $0x28] sm:$0xff] }
  0x19   :  { %311 = vmatpush.msra.mxu2 %v88_v5  ;;  %103 = vmatpush.msra.mxu0 %v88_v5  ;;  %v236_v0 = vld [vmem:[#allocation7 + $0x20] sm:$0xff]  ;;  %v235_v1 = vld [vmem:[#allocation7 + $0x18] sm:$0xff]  ;;  %v234_v2 = vld [vmem:[#allocation7 + $0x10] sm:$0xff] }
  0x1a   :  { %324 = vmatpush.msra.mxu3 %v245_v55  ;;  %254 = vmatpush.msra.mxu1 %v245_v55  ;;  %v233_v3 = vld [vmem:[#allocation7 + $0x8] sm:$0xff]  ;;  %v232_v4 = vld [vmem:[#allocation7] sm:$0xff] }
  0x1b   :  { %312 = vmatpush.msra.mxu2 %v87_v6  ;;  %104 = vmatpush.msra.mxu0 %v87_v6  ;;  %v347_v32 = vld [vmem:[%s566_s4] ss:$0 sm:$0xff] }
  0x1c   :  { %325 = vmatpush.msra.mxu3 %v244_v56  ;;  %255 = vmatpush.msra.mxu1 %v244_v56 }
  0x1d   :  { %313 = vmatpush.msra.mxu2 %v86_v7  ;;  %105 = vmatpush.msra.mxu0 %v86_v7 }
  0x1e   :  { %326 = vmatpush.msra.mxu3 %v243_v57  ;;  %256 = vmatpush.msra.mxu1 %v243_v57 }
  0x1f   :  { %314 = vmatpush.msra.mxu2 %v85_v8  ;;  %106 = vmatpush.msra.mxu0 %v85_v8 }
  0x20   :  { %327 = vmatpush.msra.mxu3 %v242_v58  ;;  %257 = vmatpush.msra.mxu1 %v242_v58 }
  0x21   :  { %315 = vmatpush.msra.mxu2 %v84_v9  ;;  %107 = vmatpush.msra.mxu0 %v84_v9 }
  0x22   :  { %328 = vmatpush.msra.mxu3 %v241_v59  ;;  %258 = vmatpush.msra.mxu1 %v241_v59 }
  0x23   :  { %316 = vmatpush.msra.mxu2 %v83_v10  ;;  %108 = vmatpush.msra.mxu0 %v83_v10 }
  0x24   :  { %329 = vmatpush.msra.mxu3 %v240_v60  ;;  %259 = vmatpush.msra.mxu1 %v240_v60 }
  0x25   :  { %317 = vmatpush.msra.mxu2 %v82_v11  ;;  %109 = vmatpush.msra.mxu0 %v82_v11 }
  0x26   :  { %330 = vmatpush.msra.mxu3 %v239_v61  ;;  %260 = vmatpush.msra.mxu1 %v239_v61 }
  0x27   :  { %318 = vmatpush.msra.mxu2 %v81_v12  ;;  %110 = vmatpush.msra.mxu0 %v81_v12 }
  0x28   :  { %331 = vmatpush.msra.mxu3 %v238_v62  ;;  %261 = vmatpush.msra.mxu1 %v238_v62 }
  0x29   :  { %319 = vmatpush.msra.mxu2 %v80_v13  ;;  %111 = vmatpush.msra.mxu0 %v80_v13 }
  0x2a   :  { %332 = vmatpush.msra.mxu3 %v237_v63  ;;  %262 = vmatpush.msra.mxu1 %v237_v63 }
  0x2b   :  { %320 = vmatpush.msra.mxu2 %v79_v14  ;;  %112 = vmatpush.msra.mxu0 %v79_v14 }
  0x2c   :  { %333 = vmatpush.msra.mxu3 %v236_v0  ;;  %263 = vmatpush.msra.mxu1 %v236_v0 }
  0x2d   :  { %321 = vmatpush.msra.mxu2 %v78_v15  ;;  %113 = vmatpush.msra.mxu0 %v78_v15 }
  0x2e   :  { %120 = vmatmul.f32.vlgmr.msra.gmra.mxu2 %v76_v16  ;;  %114 = vmatmul.f32.vlgmr.msra.gmra.mxu0 %v74_v17 }
  0x2f   :  { %334 = vmatpush.msra.mxu3 %v235_v1  ;;  %264 = vmatpush.msra.mxu1 %v235_v1 }
  0x31   :  { %335 = vmatpush.msra.mxu3 %v234_v2  ;;  %265 = vmatpush.msra.mxu1 %v234_v2 }
  0x33   :  { %336 = vmatpush.msra.mxu3 %v233_v3  ;;  %266 = vmatpush.msra.mxu1 %v233_v3 }
  0x35   :  { %337 = vmatpush.msra.mxu3 %v232_v4  ;;  %267 = vmatpush.msra.mxu1 %v232_v4 }
  0x36   :  { %123 = vmatmul.f32.gmra.mxu2 %v77_v18  ;;  %117 = vmatmul.f32.gmra.mxu0 %v75_v19 }
  0xab   :  { %v115_v23 = vpop.f32.mrf.mxu0 }
  0xac   :  { %v116_v24 = vadd.f32 %v345_v20, %v115_v23 }
  0xb1   :  { %v121_v21 = vpop.f32.mrf.mxu2 }
  0xb2   :  { %v122_v22 = vadd.f32 %v345_v20, %v121_v21 }
  0xb3   :  { %v118_v27 = vpop.f32.mrf.mxu0 }
  0xb4   :  { %136 = vadd.xlane.f32.xlu0 %v122_v22  ;;  %v119_v28 = vadd.f32 %v345_v20, %v118_v27  ;;  %v346_v27 = vld [vmem:[%s565_s3] ss:$0 sm:$0xff] }
  0xb9   :  { %v124_v25 = vpop.f32.mrf.mxu2 }
  0xba   :  { %v125_v26 = vadd.f32 %v345_v20, %v124_v25 }
  0xbc   :  { %138 = vadd.xlane.f32.xlu1 %v125_v26  ;;  %132 = vadd.xlane.f32.xlu0 %v116_v24 }
  0xc4   :  { %134 = vadd.xlane.f32.xlu1 %v119_v28 }
 0x127   :  { %v137_v33 = vpop.xlane.xlu0 %136 }
 0x128   :  { %v142_v34 = vmul.f32 0.03125, %v137_v33 }
 0x12a   :  { %v146_v37 = vsub.f32 %v122_v22, %v142_v34 }
 0x12c   :  { %v527_v38 = vmul.f32 %v305_v36, %v146_v37 }
 0x12e   :  { %v154_v39 = vmul.f32 %v527_v38, %v527_v38 }
 0x12f   :  { %v139_v40 = vpop.xlane.xlu1 %138  ;;  %v133_v41 = vpop.xlane.xlu0 %132 }
 0x130   :  { %v143_v42 = vmul.f32 0.03125, %v139_v40  ;;  %v140_v43 = vmul.f32 0.03125, %v133_v41  ;;  %160 = vadd.xlane.f32.xlu2 %v154_v39 }
 0x132   :  { %v147_v44 = vsub.f32 %v125_v26, %v143_v42  ;;  %v144_v45 = vsub.f32 %v116_v24, %v140_v43 }
 0x134   :  { %v531_v46 = vmul.f32 %v305_v36, %v147_v44  ;;  %v533_v47 = vmul.f32 %v305_v36, %v144_v45 }
 0x136   :  { %v155_v48 = vmul.f32 %v531_v46, %v531_v46  ;;  %v152_v49 = vmul.f32 %v533_v47, %v533_v47 }
 0x137   :  { %v135_v50 = vpop.xlane.xlu1 %134 }
 0x138   :  { %v141_v51 = vmul.f32 0.03125, %v135_v50  ;;  %162 = vadd.xlane.f32.xlu0 %v155_v48  ;;  %156 = vadd.xlane.f32.xlu2 %v152_v49 }
 0x13a   :  { %v145_v52 = vsub.f32 %v119_v28, %v141_v51 }
 0x13c   :  { %v539_v53 = vmul.f32 %v305_v36, %v145_v52 }
 0x13e   :  { %v153_v54 = vmul.f32 %v539_v53, %v539_v53 }
 0x140   :  { %158 = vadd.xlane.f32.xlu1 %v153_v54 }
 0x1a3   :  { %v161_v5 = vpop.xlane.xlu2 %160 }
 0x1a4   :  { %v166_v6 = vmul.f32 0.03125, %v161_v5 }
 0x1a6   :  { %v170_v7 = vadd.f32 1e-06, %v166_v6 }
 0x1a8   :  { %349 = vrsqrt.f32 %v170_v7  ;;  %vm198_vm2 = vweird.f32 %v170_v7 }
 0x1ab   :  { %v157_v8 = vpop.xlane.xlu2 %156  ;;  %v163_v9 = vpop.xlane.xlu0 %162 }
 0x1ac   :  { %v164_v10 = vmul.f32 0.03125, %v157_v8  ;;  %v167_v11 = vmul.f32 0.03125, %v163_v9 }
 0x1ae   :  { %v350_v12 = vpop.eup %349  ;;  %v168_v13 = vadd.f32 1e-06, %v164_v10  ;;  %v171_v14 = vadd.f32 1e-06, %v167_v11 }
 0x1af   :  { %v193_v15 = vmul.f32 %v350_v12, %v170_v7  ;;  %vm199_vm1 = vweird.f32 %v350_v12 }
 0x1b0   :  { %351 = vrsqrt.f32 %v168_v13  ;;  %vm200_vm3 = vmor %vm198_vm2, %vm199_vm1  ;;  %vm178_vm6 = vweird.f32 %v168_v13  ;;  %vm208_vm8 = vweird.f32 %v171_v14 }
 0x1b1   :  { %v194_v16 = vmul.f32 %v350_v12, %v193_v15  ;;  %353 = vrsqrt.f32 %v171_v14 }
 0x1b3   :  { %v195_v17 = vmul.f32 0.5, %v194_v16  ;;  %v159_v18 = vpop.xlane.xlu1 %158 }
 0x1b4   :  { %v165_v19 = vmul.f32 0.03125, %v159_v18 }
 0x1b5   :  { %v196_v20 = vsub.f32 1.5, %v195_v17 }
 0x1b6   :  { %v352_v21 = vpop.eup %351  ;;  %v169_v22 = vadd.f32 1e-06, %v165_v19 }
 0x1b7   :  { %v354_v23 = vpop.eup %353  ;;  %v197_v24 = vmul.f32 %v350_v12, %v196_v20  ;;  %v173_v25 = vmul.f32 %v352_v21, %v168_v13  ;;  %vm179_vm4 = vweird.f32 %v352_v21 }
 0x1b8   :  { %v203_v26 = vmul.f32 %v354_v23, %v171_v14  ;;  %355 = vrsqrt.f32 %v169_v22  ;;  %vm209_vm5 = vweird.f32 %v354_v23  ;;  %vm180_vm7 = vmor %vm178_vm6, %vm179_vm4  ;;  %vm188_vm11 = vweird.f32 %v169_v22 }
 0x1b9   :  { %v174_v28 = vmul.f32 %v352_v21, %v173_v25  ;;  %v201_v29 = vsel %vm200_vm3, %v350_v12, %v197_v24  ;;  %vm210_vm9 = vmor %vm208_vm8, %vm209_vm5 }
 0x1ba   :  { %v204_v30 = vmul.f32 %v354_v23, %v203_v26  ;;  %v214_v31 = vmul.f32 %v201_v29, %v527_v38 }
 0x1bb   :  { %v175_v33 = vmul.f32 0.5, %v174_v28 }
 0x1bc   :  { %v205_v34 = vmul.f32 0.5, %v204_v30  ;;  %v222_v35 = vmul.f32 %v346_v27, %v214_v31 }
 0x1bd   :  { %v176_v36 = vsub.f32 1.5, %v175_v33 }
 0x1be   :  { %v356_v37 = vpop.eup %355  ;;  %v206_v39 = vsub.f32 1.5, %v205_v34  ;;  %v230_v40 = vadd.f32 %v347_v32, %v222_v35 }
 0x1bf   :  { %v177_v41 = vmul.f32 %v352_v21, %v176_v36  ;;  %v183_v42 = vmul.f32 %v356_v37, %v169_v22  ;;  %vm189_vm10 = vweird.f32 %v356_v37 }
 0x1c0   :  { %v207_v43 = vmul.f32 %v354_v23, %v206_v39  ;;  %274 = vmatmul.f32.vlgmr.msra.gmra.mxu3 %v230_v40  ;;  %vm190_vm12 = vmor %vm188_vm11, %vm189_vm10 }
 0x1c1   :  { %v184_v38 = vmul.f32 %v356_v37, %v183_v42  ;;  %v181_v44 = vsel %vm180_vm7, %v352_v21, %v177_v41 }
 0x1c2   :  { %v212_v45 = vmul.f32 %v181_v44, %v533_v47  ;;  %v211_v48 = vsel %vm210_vm9, %v354_v23, %v207_v43 }
 0x1c3   :  { %v185_v49 = vmul.f32 0.5, %v184_v38  ;;  %v215_v50 = vmul.f32 %v211_v48, %v531_v46  ;;  %v348_v46 = vld [vmem:[%s568_s6] ss:$0 sm:$0xff] }
 0x1c4   :  { %v220_v51 = vmul.f32 %v346_v27, %v212_v45 }
 0x1c5   :  { %v186_v52 = vsub.f32 1.5, %v185_v49  ;;  %v223_v54 = vmul.f32 %v346_v27, %v215_v50 }
 0x1c6   :  { %v228_v55 = vadd.f32 %v347_v32, %v220_v51 }
 0x1c7   :  { %v187_v56 = vmul.f32 %v356_v37, %v186_v52  ;;  %v231_v57 = vadd.f32 %v347_v32, %v223_v54 }
 0x1c8   :  { %268 = vmatmul.f32.vlgmr.msra.gmra.mxu1 %v228_v55 }
 0x1c9   :  { %277 = vmatmul.f32.gmra.mxu3 %v231_v57  ;;  %v191_v58 = vsel %vm190_vm12, %v356_v37, %v187_v56 }
 0x1ca   :  { %v213_v59 = vmul.f32 %v191_v58, %v539_v53 }
 0x1cc   :  { %v221_v60 = vmul.f32 %v346_v27, %v213_v59 }
 0x1ce   :  { %v229_v47 = vadd.f32 %v347_v32, %v221_v60 }
 0x1d0   :  { %271 = vmatmul.f32.gmra.mxu1 %v229_v47 }
 0x243   :  { %v275_v61 = vpop.f32.mrf.mxu3 }
 0x244   :  { %v276_v62 = vadd.f32 %v348_v46, %v275_v61 }
 0x245   :  { %v269_v63 = vpop.f32.mrf.mxu1 }
 0x246   :  { %283 = vst [vmem:[#allocation8 + $0x10] sm:$0xff] %v276_v62  ;;  %v270_v0 = vadd.f32 %v348_v46, %v269_v63 }
 0x248   :  { %281 = vst [vmem:[#allocation8] sm:$0xff] %v270_v0 }
 0x24c   :  { %v278_v53 = vpop.f32.mrf.mxu3 }
 0x24d   :  { %v279_v1 = vadd.f32 %v348_v46, %v278_v53  ;;  %v272_v2 = vpop.f32.mrf.mxu1 }
 0x24e   :  { %v273_v3 = vadd.f32 %v348_v46, %v272_v2 }
 0x24f   :  { %284 = vst [vmem:[#allocation8 + $0x18] sm:$0xff] %v279_v1 }
 0x250   :  { %282 = vst [vmem:[#allocation8 + $0x8] sm:$0xff] %v273_v3 }
 0x251   :  { %297 = dma.vmem_to_hbm [thread:$0]  %s290_s21, 512, %s292_s24, [#allocation4], %s460_s9, %s460_s9, %s461_s10  }
 0x252   :  { %457 = dma.done.wait [#allocation4], 512  }
 0x253   :  { %458 = vsyncadd [#allocation4], 4294966784 }
 0x254   :  { %302 = vsyncpa [#allocation3], 1 }
 0x255   :  { %303 = vsyncpa [#allocation6], 1 }
 0x256   :  { %304 = vsyncpa [#allocation4], 1 }

// kernel: tpu_custom_call.1
= control target key start
LH: loop header
LB: loop body
LE: loop exit
PB: predicated region body
PF: predicated region fallthrough
CT: control target
= control target key end

     0   :  { %12 = vsyncpa [#allocation3], 0  ;;  %s562_s0 = inlined_call_operand.hbm [shape: f32[32,128], index: 0, kind: input, shape index: {}]   ;;  %s563_s1 = inlined_call_operand.hbm [shape: f32[128,128], index: 1, kind: input, shape index: {}]   ;;  %s564_s2 = inlined_call_operand.vmem [shape: f32[1,128], index: 2, kind: input, shape index: {}]   ;;  %s565_s3 = inlined_call_operand.vmem [shape: f32[1,128], index: 3, kind: input, shape index: {}]   ;;  %s566_s4 = inlined_call_operand.vmem [shape: f32[1,128], index: 4, kind: input, shape index: {}]   ;;  %s567_s5 = inlined_call_operand.hbm [shape: f32[128,128], index: 5, kind: input, shape index: {}]   ;;  %s568_s6 = inlined_call_operand.vmem [shape: f32[1,128], index: 6, kind: input, shape index: {}]   ;;  %s569_s7 = inlined_call_operand.hbm [shape: f32[32,128], index: 7, kind: output, shape index: {}]  }
   0x1   :  { %13 = vsyncpa [#allocation6], 0 }
   0x2   :  { %14 = vsyncpa [#allocation4], 0  ;;  %s32_s26 = sshll.u32 %s563_s1, 4  ;;  %s459_s27 = smov [#allocation5]   ;;  %s33_s26 = int_to_ptr.hbm [resolvable:$true] %s32_s26 }
   0x3   :  { %s34_s28 = sshll.u32 %s459_s27, 4  ;;  %s19_s8 = sshll.u32 %s562_s0, 4  ;;  %s35_s28 = int_to_ptr.vmem [resolvable:$true] %s34_s28  ;;  %s20_s8 = int_to_ptr.hbm [resolvable:$true] %s19_s8 }
   0x4   :  { %s460_s9 = smov 128   ;;  %s461_s10 = smov 8  }
   0x5   :  { %40 = dma.hbm_to_vmem [thread:$0]  %s33_s26, 2048, %s35_s28, [#allocation6], %s460_s9, %s460_s9, %s461_s10  }
   0x6   :  { %s462_s11 = smov [#allocation2]   ;;  %s51_s1 = sshll.u32 %s567_s5, 4  ;;  %s52_s1 = int_to_ptr.hbm [resolvable:$true] %s51_s1 }
   0x7   :  { %s21_s12 = sshll.u32 %s462_s11, 4  ;;  %s463_s0 = smov [#allocation7]   ;;  %s22_s12 = int_to_ptr.vmem [resolvable:$true] %s21_s12 }
   0x8   :  { %27 = dma.hbm_to_vmem [thread:$0]  %s20_s8, 512, %s22_s12, [#allocation3], %s460_s9, %s460_s9, %s461_s10  }
   0x9   :  { %s53_s15 = sshll.u32 %s463_s0, 4  ;;  %s54_s15 = int_to_ptr.vmem [resolvable:$true] %s53_s15 }
   0xa   :  { %59 = dma.hbm_to_vmem [thread:$0]  %s52_s1, 2048, %s54_s15, [#allocation6], %s460_s9, %s460_s9, %s461_s10  }
   0xb   :  { %453 = dma.done.wait [#allocation3], 512  }
   0xc   :  { %454 = vsyncadd [#allocation3], 4294966784 }
   0xd   :  { %455 = dma.done.wait [#allocation6], 4096  }
   0xe   :  { %456 = vsyncadd [#allocation6], 4294963200  ;;  %v93_v0 = vld [vmem:[#allocation5 + $0x78] sm:$0xff]  ;;  %v92_v1 = vld [vmem:[#allocation5 + $0x70] sm:$0xff]  ;;  %v127_v29 = vlaneseq  ;;  %v464_v35 = vmov 0.0   ;;  %s465_s20 = smov [#allocation8]  }
   0xf   :  { %306 = vmatpush.msra.mxu2 %v93_v0  ;;  %98 = vmatpush.msra.mxu0 %v93_v0  ;;  %v91_v2 = vld [vmem:[#allocation5 + $0x68] sm:$0xff]  ;;  %v90_v3 = vld [vmem:[#allocation5 + $0x60] sm:$0xff]  ;;  %v89_v4 = vld [vmem:[#allocation5 + $0x58] sm:$0xff]  ;;  %s289_s21 = sshll.u32 %s465_s20, 4  ;;  %s291_s24 = sshll.u32 %s569_s7, 4  ;;  %s290_s21 = int_to_ptr.vmem [resolvable:$true] %s289_s21  ;;  %s292_s24 = int_to_ptr.hbm [resolvable:$true] %s291_s24 }
  0x10   :  { %v88_v5 = vld [vmem:[#allocation5 + $0x50] sm:$0xff]  ;;  %v87_v6 = vld [vmem:[#allocation5 + $0x48] sm:$0xff]  ;;  %v86_v7 = vld [vmem:[#allocation5 + $0x40] sm:$0xff]  ;;  %v128_v32 = vand.u32 127, %v127_v29 }
  0x11   :  { %307 = vmatpush.msra.mxu2 %v92_v1  ;;  %99 = vmatpush.msra.mxu0 %v92_v1  ;;  %v85_v8 = vld [vmem:[#allocation5 + $0x38] sm:$0xff]  ;;  %v84_v9 = vld [vmem:[#allocation5 + $0x30] sm:$0xff]  ;;  %v83_v10 = vld [vmem:[#allocation5 + $0x28] sm:$0xff] }
  0x12   :  { %v82_v11 = vld [vmem:[#allocation5 + $0x20] sm:$0xff]  ;;  %v81_v12 = vld [vmem:[#allocation5 + $0x18] sm:$0xff]  ;;  %v80_v13 = vld [vmem:[#allocation5 + $0x10] sm:$0xff]  ;;  %vm129_vm0 = vcmp.lt.s32.totalorder %v128_v32, 32 }
  0x13   :  { %308 = vmatpush.msra.mxu2 %v91_v2  ;;  %100 = vmatpush.msra.mxu0 %v91_v2  ;;  %v79_v14 = vld [vmem:[#allocation5 + $0x8] sm:$0xff]  ;;  %v78_v15 = vld [vmem:[#allocation5] sm:$0xff]  ;;  %v76_v16 = vld [vmem:[#allocation2 + $0x10] sm:$0xff]  ;;  %v305_v36 = vsel %vm129_vm0, 1.0, %v464_v35 }
  0x14   :  { %v74_v17 = vld [vmem:[#allocation2] sm:$0xff]  ;;  %v77_v18 = vld [vmem:[#allocation2 + $0x18] sm:$0xff]  ;;  %v75_v19 = vld [vmem:[#allocation2 + $0x8] sm:$0xff] }
  0x15   :  { %309 = vmatpush.msra.mxu2 %v90_v3  ;;  %101 = vmatpush.msra.mxu0 %v90_v3  ;;  %v345_v20 = vld [vmem:[%s564_s2] ss:$0 sm:$0xff]  ;;  %v247_v30 = vld [vmem:[#allocation7 + $0x78] sm:$0xff]  ;;  %v246_v31 = vld [vmem:[#allocation7 + $0x70] sm:$0xff] }
  0x16   :  { %322 = vmatpush.msra.mxu3 %v247_v30  ;;  %252 = vmatpush.msra.mxu1 %v247_v30  ;;  %v245_v55 = vld [vmem:[#allocation7 + $0x68] sm:$0xff]  ;;  %v244_v56 = vld [vmem:[#allocation7 + $0x60] sm:$0xff]  ;;  %v243_v57 = vld [vmem:[#allocation7 + $0x58] sm:$0xff] }
  0x17   :  { %310 = vmatpush.msra.mxu2 %v89_v4  ;;  %102 = vmatpush.msra.mxu0 %v89_v4  ;;  %v242_v58 = vld [vmem:[#allocation7 + $0x50] sm:$0xff]  ;;  %v241_v59 = vld [vmem:[#allocation7 + $0x48] sm:$0xff]  ;;  %v240_v60 = vld [vmem:[#allocation7 + $0x40] sm:$0xff] }
  0x18   :  { %323 = vmatpush.msra.mxu3 %v246_v31  ;;  %253 = vmatpush.msra.mxu1 %v246_v31  ;;  %v239_v61 = vld [vmem:[#allocation7 + $0x38] sm:$0xff]  ;;  %v238_v62 = vld [vmem:[#allocation7 + $0x30] sm:$0xff]  ;;  %v237_v63 = vld [vmem:[#allocation7 + $0x28] sm:$0xff] }
  0x19   :  { %311 = vmatpush.msra.mxu2 %v88_v5  ;;  %103 = vmatpush.msra.mxu0 %v88_v5  ;;  %v236_v0 = vld [vmem:[#allocation7 + $0x20] sm:$0xff]  ;;  %v235_v1 = vld [vmem:[#allocation7 + $0x18] sm:$0xff]  ;;  %v234_v2 = vld [vmem:[#allocation7 + $0x10] sm:$0xff] }
  0x1a   :  { %324 = vmatpush.msra.mxu3 %v245_v55  ;;  %254 = vmatpush.msra.mxu1 %v245_v55  ;;  %v233_v3 = vld [vmem:[#allocation7 + $0x8] sm:$0xff]  ;;  %v232_v4 = vld [vmem:[#allocation7] sm:$0xff] }
  0x1b   :  { %312 = vmatpush.msra.mxu2 %v87_v6  ;;  %104 = vmatpush.msra.mxu0 %v87_v6  ;;  %v347_v32 = vld [vmem:[%s566_s4] ss:$0 sm:$0xff] }
  0x1c   :  { %325 = vmatpush.msra.mxu3 %v244_v56  ;;  %255 = vmatpush.msra.mxu1 %v244_v56 }
  0x1d   :  { %313 = vmatpush.msra.mxu2 %v86_v7  ;;  %105 = vmatpush.msra.mxu0 %v86_v7 }
  0x1e   :  { %326 = vmatpush.msra.mxu3 %v243_v57  ;;  %256 = vmatpush.msra.mxu1 %v243_v57 }
  0x1f   :  { %314 = vmatpush.msra.mxu2 %v85_v8  ;;  %106 = vmatpush.msra.mxu0 %v85_v8 }
  0x20   :  { %327 = vmatpush.msra.mxu3 %v242_v58  ;;  %257 = vmatpush.msra.mxu1 %v242_v58 }
  0x21   :  { %315 = vmatpush.msra.mxu2 %v84_v9  ;;  %107 = vmatpush.msra.mxu0 %v84_v9 }
  0x22   :  { %328 = vmatpush.msra.mxu3 %v241_v59  ;;  %258 = vmatpush.msra.mxu1 %v241_v59 }
  0x23   :  { %316 = vmatpush.msra.mxu2 %v83_v10  ;;  %108 = vmatpush.msra.mxu0 %v83_v10 }
  0x24   :  { %329 = vmatpush.msra.mxu3 %v240_v60  ;;  %259 = vmatpush.msra.mxu1 %v240_v60 }
  0x25   :  { %317 = vmatpush.msra.mxu2 %v82_v11  ;;  %109 = vmatpush.msra.mxu0 %v82_v11 }
  0x26   :  { %330 = vmatpush.msra.mxu3 %v239_v61  ;;  %260 = vmatpush.msra.mxu1 %v239_v61 }
  0x27   :  { %318 = vmatpush.msra.mxu2 %v81_v12  ;;  %110 = vmatpush.msra.mxu0 %v81_v12 }
  0x28   :  { %331 = vmatpush.msra.mxu3 %v238_v62  ;;  %261 = vmatpush.msra.mxu1 %v238_v62 }
  0x29   :  { %319 = vmatpush.msra.mxu2 %v80_v13  ;;  %111 = vmatpush.msra.mxu0 %v80_v13 }
  0x2a   :  { %332 = vmatpush.msra.mxu3 %v237_v63  ;;  %262 = vmatpush.msra.mxu1 %v237_v63 }
  0x2b   :  { %320 = vmatpush.msra.mxu2 %v79_v14  ;;  %112 = vmatpush.msra.mxu0 %v79_v14 }
  0x2c   :  { %333 = vmatpush.msra.mxu3 %v236_v0  ;;  %263 = vmatpush.msra.mxu1 %v236_v0 }
  0x2d   :  { %321 = vmatpush.msra.mxu2 %v78_v15  ;;  %113 = vmatpush.msra.mxu0 %v78_v15 }
  0x2e   :  { %120 = vmatmul.f32.vlgmr.msra.gmra.mxu2 %v76_v16  ;;  %114 = vmatmul.f32.vlgmr.msra.gmra.mxu0 %v74_v17 }
  0x2f   :  { %334 = vmatpush.msra.mxu3 %v235_v1  ;;  %264 = vmatpush.msra.mxu1 %v235_v1 }
  0x31   :  { %335 = vmatpush.msra.mxu3 %v234_v2  ;;  %265 = vmatpush.msra.mxu1 %v234_v2 }
  0x33   :  { %336 = vmatpush.msra.mxu3 %v233_v3  ;;  %266 = vmatpush.msra.mxu1 %v233_v3 }
  0x35   :  { %337 = vmatpush.msra.mxu3 %v232_v4  ;;  %267 = vmatpush.msra.mxu1 %v232_v4 }
  0x36   :  { %123 = vmatmul.f32.gmra.mxu2 %v77_v18  ;;  %117 = vmatmul.f32.gmra.mxu0 %v75_v19 }
  0xab   :  { %v115_v23 = vpop.f32.mrf.mxu0 }
  0xac   :  { %v116_v24 = vadd.f32 %v345_v20, %v115_v23 }
  0xb1   :  { %v121_v21 = vpop.f32.mrf.mxu2 }
  0xb2   :  { %v122_v22 = vadd.f32 %v345_v20, %v121_v21 }
  0xb3   :  { %v118_v27 = vpop.f32.mrf.mxu0 }
  0xb4   :  { %136 = vadd.xlane.f32.xlu0 %v122_v22  ;;  %v119_v28 = vadd.f32 %v345_v20, %v118_v27  ;;  %v346_v27 = vld [vmem:[%s565_s3] ss:$0 sm:$0xff] }
  0xb9   :  { %v124_v25 = vpop.f32.mrf.mxu2 }
  0xba   :  { %v125_v26 = vadd.f32 %v345_v20, %v124_v25 }
  0xbc   :  { %138 = vadd.xlane.f32.xlu1 %v125_v26  ;;  %132 = vadd.xlane.f32.xlu0 %v116_v24 }
  0xc4   :  { %134 = vadd.xlane.f32.xlu1 %v119_v28 }
 0x127   :  { %v137_v33 = vpop.xlane.xlu0 %136 }
 0x128   :  { %v142_v34 = vmul.f32 0.03125, %v137_v33 }
 0x12a   :  { %v146_v37 = vsub.f32 %v122_v22, %v142_v34 }
 0x12c   :  { %v527_v38 = vmul.f32 %v305_v36, %v146_v37 }
 0x12e   :  { %v154_v39 = vmul.f32 %v527_v38, %v527_v38 }
 0x12f   :  { %v139_v40 = vpop.xlane.xlu1 %138  ;;  %v133_v41 = vpop.xlane.xlu0 %132 }
 0x130   :  { %v143_v42 = vmul.f32 0.03125, %v139_v40  ;;  %v140_v43 = vmul.f32 0.03125, %v133_v41  ;;  %160 = vadd.xlane.f32.xlu2 %v154_v39 }
 0x132   :  { %v147_v44 = vsub.f32 %v125_v26, %v143_v42  ;;  %v144_v45 = vsub.f32 %v116_v24, %v140_v43 }
 0x134   :  { %v531_v46 = vmul.f32 %v305_v36, %v147_v44  ;;  %v533_v47 = vmul.f32 %v305_v36, %v144_v45 }
 0x136   :  { %v155_v48 = vmul.f32 %v531_v46, %v531_v46  ;;  %v152_v49 = vmul.f32 %v533_v47, %v533_v47 }
 0x137   :  { %v135_v50 = vpop.xlane.xlu1 %134 }
 0x138   :  { %v141_v51 = vmul.f32 0.03125, %v135_v50  ;;  %162 = vadd.xlane.f32.xlu0 %v155_v48  ;;  %156 = vadd.xlane.f32.xlu2 %v152_v49 }
 0x13a   :  { %v145_v52 = vsub.f32 %v119_v28, %v141_v51 }
 0x13c   :  { %v539_v53 = vmul.f32 %v305_v36, %v145_v52 }
 0x13e   :  { %v153_v54 = vmul.f32 %v539_v53, %v539_v53 }
 0x140   :  { %158 = vadd.xlane.f32.xlu1 %v153_v54 }
 0x1a3   :  { %v161_v5 = vpop.xlane.xlu2 %160 }
 0x1a4   :  { %v166_v6 = vmul.f32 0.03125, %v161_v5 }
 0x1a6   :  { %v170_v7 = vadd.f32 1e-06, %v166_v6 }
 0x1a8   :  { %349 = vrsqrt.f32 %v170_v7  ;;  %vm198_vm2 = vweird.f32 %v170_v7 }
 0x1ab   :  { %v157_v8 = vpop.xlane.xlu2 %156  ;;  %v163_v9 = vpop.xlane.xlu0 %162 }
 0x1ac   :  { %v164_v10 = vmul.f32 0.03125, %v157_v8  ;;  %v167_v11 = vmul.f32 0.03125, %v163_v9 }
 0x1ae   :  { %v350_v12 = vpop.eup %349  ;;  %v168_v13 = vadd.f32 1e-06, %v164_v10  ;;  %v171_v14 = vadd.f32 1e-06, %v167_v11 }
 0x1af   :  { %v193_v15 = vmul.f32 %v350_v12, %v170_v7  ;;  %vm199_vm1 = vweird.f32 %v350_v12 }
 0x1b0   :  { %351 = vrsqrt.f32 %v168_v13  ;;  %vm200_vm3 = vmor %vm198_vm2, %vm199_vm1  ;;  %vm178_vm6 = vweird.f32 %v168_v13  ;;  %vm208_vm8 = vweird.f32 %v171_v14 }
 0x1b1   :  { %v194_v16 = vmul.f32 %v350_v12, %v193_v15  ;;  %353 = vrsqrt.f32 %v171_v14 }
 0x1b3   :  { %v195_v17 = vmul.f32 0.5, %v194_v16  ;;  %v159_v18 = vpop.xlane.xlu1 %158 }
 0x1b4   :  { %v165_v19 = vmul.f32 0.03125, %v159_v18 }
 0x1b5   :  { %v196_v20 = vsub.f32 1.5, %v195_v17 }
 0x1b6   :  { %v352_v21 = vpop.eup %351  ;;  %v169_v22 = vadd.f32 1e-06, %v165_v19 }
 0x1b7   :  { %v354_v23 = vpop.eup %353  ;;  %v197_v24 = vmul.f32 %v350_v12, %v196_v20  ;;  %v173_v25 = vmul.f32 %v352_v21, %v168_v13  ;;  %vm179_vm4 = vweird.f32 %v352_v21 }
 0x1b8   :  { %v203_v26 = vmul.f32 %v354_v23, %v171_v14  ;;  %355 = vrsqrt.f32 %v169_v22  ;;  %vm209_vm5 = vweird.f32 %v354_v23  ;;  %vm180_vm7 = vmor %vm178_vm6, %vm179_vm4  ;;  %vm188_vm11 = vweird.f32 %v169_v22 }
 0x1b9   :  { %v174_v28 = vmul.f32 %v352_v21, %v173_v25  ;;  %v201_v29 = vsel %vm200_vm3, %v350_v12, %v197_v24  ;;  %vm210_vm9 = vmor %vm208_vm8, %vm209_vm5 }
 0x1ba   :  { %v204_v30 = vmul.f32 %v354_v23, %v203_v26  ;;  %v214_v31 = vmul.f32 %v201_v29, %v527_v38 }
 0x1bb   :  { %v175_v33 = vmul.f32 0.5, %v174_v28 }
 0x1bc   :  { %v205_v34 = vmul.f32 0.5, %v204_v30  ;;  %v222_v35 = vmul.f32 %v346_v27, %v214_v31 }
 0x1bd   :  { %v176_v36 = vsub.f32 1.5, %v175_v33 }
 0x1be   :  { %v356_v37 = vpop.eup %355  ;;  %v206_v39 = vsub.f32 1.5, %v205_v34  ;;  %v230_v40 = vadd.f32 %v347_v32, %v222_v35 }
 0x1bf   :  { %v177_v41 = vmul.f32 %v352_v21, %v176_v36  ;;  %v183_v42 = vmul.f32 %v356_v37, %v169_v22  ;;  %vm189_vm10 = vweird.f32 %v356_v37 }
 0x1c0   :  { %v207_v43 = vmul.f32 %v354_v23, %v206_v39  ;;  %274 = vmatmul.f32.vlgmr.msra.gmra.mxu3 %v230_v40  ;;  %vm190_vm12 = vmor %vm188_vm11, %vm189_vm10 }
 0x1c1   :  { %v184_v38 = vmul.f32 %v356_v37, %v183_v42  ;;  %v181_v44 = vsel %vm180_vm7, %v352_v21, %v177_v41 }
 0x1c2   :  { %v212_v45 = vmul.f32 %v181_v44, %v533_v47  ;;  %v211_v48 = vsel %vm210_vm9, %v354_v23, %v207_v43 }
 0x1c3   :  { %v185_v49 = vmul.f32 0.5, %v184_v38  ;;  %v215_v50 = vmul.f32 %v211_v48, %v531_v46  ;;  %v348_v46 = vld [vmem:[%s568_s6] ss:$0 sm:$0xff] }
 0x1c4   :  { %v220_v51 = vmul.f32 %v346_v27, %v212_v45 }
 0x1c5   :  { %v186_v52 = vsub.f32 1.5, %v185_v49  ;;  %v223_v54 = vmul.f32 %v346_v27, %v215_v50 }
 0x1c6   :  { %v228_v55 = vadd.f32 %v347_v32, %v220_v51 }
 0x1c7   :  { %v187_v56 = vmul.f32 %v356_v37, %v186_v52  ;;  %v231_v57 = vadd.f32 %v347_v32, %v223_v54 }
 0x1c8   :  { %268 = vmatmul.f32.vlgmr.msra.gmra.mxu1 %v228_v55 }
 0x1c9   :  { %277 = vmatmul.f32.gmra.mxu3 %v231_v57  ;;  %v191_v58 = vsel %vm190_vm12, %v356_v37, %v187_v56 }
 0x1ca   :  { %v213_v59 = vmul.f32 %v191_v58, %v539_v53 }
 0x1cc   :  { %v221_v60 = vmul.f32 %v346_v27, %v213_v59 }
 0x1ce   :  { %v229_v47 = vadd.f32 %v347_v32, %v221_v60 }
 0x1d0   :  { %271 = vmatmul.f32.gmra.mxu1 %v229_v47 }
 0x243   :  { %v275_v61 = vpop.f32.mrf.mxu3 }
 0x244   :  { %v276_v62 = vadd.f32 %v348_v46, %v275_v61 }
 0x245   :  { %v269_v63 = vpop.f32.mrf.mxu1 }
 0x246   :  { %283 = vst [vmem:[#allocation8 + $0x10] sm:$0xff] %v276_v62  ;;  %v270_v0 = vadd.f32 %v348_v46, %v269_v63 }
 0x248   :  { %281 = vst [vmem:[#allocation8] sm:$0xff] %v270_v0 }
 0x24c   :  { %v278_v53 = vpop.f32.mrf.mxu3 }
 0x24d   :  { %v279_v1 = vadd.f32 %v348_v46, %v278_v53  ;;  %v272_v2 = vpop.f32.mrf.mxu1 }
 0x24e   :  { %v273_v3 = vadd.f32 %v348_v46, %v272_v2 }
 0x24f   :  { %284 = vst [vmem:[#allocation8 + $0x18] sm:$0xff] %v279_v1 }
 0x250   :  { %282 = vst [vmem:[#allocation8 + $0x8] sm:$0xff] %v273_v3 }
 0x251   :  { %297 = dma.vmem_to_hbm [thread:$0]  %s290_s21, 512, %s292_s24, [#allocation4], %s460_s9, %s460_s9, %s461_s10  }
 0x252   :  { %457 = dma.done.wait [#allocation4], 512  }
 0x253   :  { %458 = vsyncadd [#allocation4], 4294966784 }
 0x254   :  { %302 = vsyncpa [#allocation3], 1 }
 0x255   :  { %303 = vsyncpa [#allocation6], 1 }
 0x256   :  { %304 = vsyncpa [#allocation4], 1 }

</bundles_post_ra>
